<compile_context>
chip_gen: v5e
topology: v5e:2x2
jax: 0.10.0
libtpu: 0.0.40
codegen_flags: <defaults>
</compile_context>

<pallas_src>
import functools
import itertools

import numpy as np
import jax
import jax.numpy as jnp
from jax import lax
from jax.experimental import pallas as pl
from jax.experimental.pallas import tpu as pltpu


def _round_up(x: int, m: int) -> int:
    return (x + m - 1) // m * m


def _cost_kernel(heat_ref, gt_t_ref, prob_ref, onehot_ref, c_ref, *,
                 cost_prob: float, cost_heat: float, d_chunk: int):
    # heat_ref  : (TQ, D)       query tile of this batch's heat vectors
    # gt_t_ref  : (D, Gpad)     this batch's gt heat vectors, pre-transposed
    # prob_ref  : (TQ, NC)      query tile of class probabilities
    # onehot_ref: (NC, Gpad)    one-hot of this batch's gt labels
    # c_ref     : (TQ, Gpad)    output cost tile
    tq, d = heat_ref.shape
    g_pad = gt_t_ref.shape[1]

    # Class gather as a one-hot matmul on the (otherwise idle) MXU:
    # probg[q, g] = prob[q, label[g]].
    probg = jnp.dot(prob_ref[...], onehot_ref[...],
                    preferred_element_type=jnp.float32)

    # L1 pairwise distance (torch.cdist, p=1): sum_d |h[i,d] - g[d,j]|.
    # Per-d (TQ, Gpad) VPU accumulation; G stays on the 128-lane axis and no
    # (TQ, G, D) intermediate is materialized.
    def accumulate(acc, h, g):
        for j in range(h.shape[1]):                 # static lane slices
            acc = acc + jnp.abs(h[:, j:j + 1] - g[j:j + 1, :])
        return acc

    acc = jnp.zeros((tq, g_pad), jnp.float32)
    n_full = d // d_chunk
    if n_full > 0:
        # Bounded unroll: fori over D-chunks so program size / live ranges
        # stay O(d_chunk) instead of O(D).
        def body(c, acc):
            base = pl.multiple_of(c * d_chunk, d_chunk)
            h = heat_ref[:, pl.ds(base, d_chunk)]
            g = gt_t_ref[pl.ds(base, d_chunk), :]
            return accumulate(acc, h, g)
        acc = lax.fori_loop(0, n_full, body, acc)
    rem = d - n_full * d_chunk
    if rem > 0:
        base = n_full * d_chunk
        acc = accumulate(acc, heat_ref[:, base:base + rem],
                         gt_t_ref[base:base + rem, :])

    c_ref[...] = cost_heat * acc + cost_prob * (1.0 - probg)


@functools.partial(jax.jit,
                   static_argnames=("cost_prob", "cost_heat", "tq_max", "d_chunk"))
def compute_cost_blocks(prob, label, heat, gt, *,
                        cost_prob: float = 1.0, cost_heat: float = 1.0,
                        tq_max: int = 512, d_chunk: int = 128):
    """Per-batch cost blocks
         C[b] = cost_heat * cdist1(heat[b], gt[b]) + cost_prob * (1 - prob[b][:, label[b]])
       (the only part of the full (B*Q, B*G) matrix the solver ever reads).
       Returns a (B, Q, G) float32 array."""
    bs, nq, d = heat.shape
    _, ng, _ = gt.shape
    nc = prob.shape[-1]
    f32 = jnp.float32

    lane = 128
    g_pad = _round_up(max(ng, 1), lane)

    # Query tile: only the sublane (2nd-to-last) dim needs a multiple of 8.
    tq = min(_round_up(nq, 8), tq_max)
    q_pad = _round_up(nq, tq)

    heat_f = heat.astype(f32)
    prob_f = prob.astype(f32)
    if q_pad != nq:                      # usually a no-op (no extra HBM pass)
        heat_f = jnp.pad(heat_f, ((0, 0), (0, q_pad - nq), (0, 0)))
        prob_f = jnp.pad(prob_f, ((0, 0), (0, q_pad - nq), (0, 0)))

    gt_t = jnp.swapaxes(gt.astype(f32), 1, 2)                     # (B, D, G), small
    gt_t = jnp.pad(gt_t, ((0, 0), (0, 0), (0, g_pad - ng)))

    # Tiny one-hot of labels: onehot[b, c, g] = (label[b, g] == c).
    onehot = (label[:, None, :].astype(jnp.int32) ==
              jnp.arange(nc, dtype=jnp.int32)[None, :, None]).astype(f32)    # (B, NC, G)
    onehot = jnp.pad(onehot, ((0, 0), (0, 0), (0, g_pad - ng)))

    kernel = functools.partial(_cost_kernel,
                               cost_prob=float(cost_prob),
                               cost_heat=float(cost_heat),
                               d_chunk=int(d_chunk))

    # Bump the scoped VMEM limit only when the (double-buffered) block
    # footprint would exceed the 32 MiB default (large-D cases).
    est = 4 * 2 * (tq * d + d * g_pad + tq * nc + nc * g_pad + tq * g_pad)
    cp_kwargs = dict(dimension_semantics=("parallel", "parallel"))
    if est > (32 << 20):
        cp_kwargs["vmem_limit_bytes"] = min(est + (4 << 20), 64 << 20)

    c_pad = pl.pallas_call(
        kernel,
        out_shape=jax.ShapeDtypeStruct((bs, q_pad, g_pad), f32),
        grid=(bs, q_pad // tq),
        in_specs=[
            pl.BlockSpec((None, tq, d), lambda b, i: (b, i, 0)),       # heat tile
            pl.BlockSpec((None, d, g_pad), lambda b, i: (b, 0, 0)),    # gt^T (per batch)
            pl.BlockSpec((None, tq, nc), lambda b, i: (b, i, 0)),      # prob tile
            pl.BlockSpec((None, nc, g_pad), lambda b, i: (b, 0, 0)),   # label one-hot
        ],
        out_specs=pl.BlockSpec((None, tq, g_pad), lambda b, i: (b, i, 0)),
        compiler_params=pltpu.CompilerParams(**cp_kwargs),
    )(heat_f, gt_t, prob_f, onehot)

    # Slice off padded queries / padded gt columns (garbage-but-finite costs)
    # before any host transfer so the assignment can never pick a padded column.
    return c_pad[:, :nq, :ng]


def _linear_sum_assignment(cost):
    """scipy if available, else exact brute force for tiny rectangular costs."""
    try:
        from scipy.optimize import linear_sum_assignment
        return linear_sum_assignment(cost)
    except Exception:
        nq, ng = cost.shape
        best, best_cost = None, None
        if ng <= nq:
            for perm in itertools.permutations(range(nq), ng):
                tot = sum(cost[perm[j], j] for j in range(ng))
                if best_cost is None or tot < best_cost:
                    best_cost, best = tot, (list(perm), list(range(ng)))
        else:
            for perm in itertools.permutations(range(ng), nq):
                tot = sum(cost[i, perm[i]] for i in range(nq))
                if best_cost is None or tot < best_cost:
                    best_cost, best = tot, (list(range(nq)), list(perm))
        rows, cols = best
        order = np.argsort(np.asarray(rows))
        return (np.asarray(rows, dtype=np.int64)[order],
                np.asarray(cols, dtype=np.int64)[order])


def hungarian_matcher(prob, label, heat, gt, *,
                      cost_prob: float = 1.0, cost_heat: float = 1.0):
    """Matches PyTorch HungarianMatcher.forward: returns per-batch
    (row_idx, col_idx) int64 assignment pairs.  Also returns the (B, Q, G)
    cost blocks for inspection/testing."""
    bs, nq = heat.shape[:2]
    ng = gt.shape[1]

    if ng == 0:   # batch with no ground-truth objects: empty assignments
        empty = np.zeros((0,), dtype=np.int64)
        return ([(empty.copy(), empty.copy()) for _ in range(bs)],
                np.zeros((bs, nq, 0), np.float32))

    C = compute_cost_blocks(prob, label, heat, gt,
                            cost_prob=cost_prob, cost_heat=cost_heat)
    C = jax.block_until_ready(C)
    C_np = np.asarray(jax.device_get(C))          # single (B, Q, G) transfer
    indices = []
    for i in range(C_np.shape[0]):
        r, c = _linear_sum_assignment(C_np[i])
        indices.append((np.asarray(r, dtype=np.int64),
                        np.asarray(c, dtype=np.int64)))
    return indices, C_np


if __name__ == "__main__":
    key = jax.random.PRNGKey(0)
    bs, nq, ng, d, nc = 2, 8, 4, 32, 4
    k1, k2, k3, k4 = jax.random.split(key, 4)
    prob = jax.nn.softmax(jax.random.normal(k1, (bs, nq, nc), jnp.float32), axis=-1)
    label = jax.random.randint(k2, (bs, ng), 0, nc, dtype=jnp.int32)
    heat = jax.random.normal(k3, (bs, nq, d), jnp.float32)
    gt = jax.random.normal(k4, (bs, ng, d), jnp.float32)

    indices, C_np = hungarian_matcher(prob, label, heat, gt)

    # Reference check of the per-batch cost blocks (the only part the original
    # module's solve ever reads) against plain numpy.
    heat_np = np.asarray(heat)
    gt_np = np.asarray(gt)
    prob_np = np.asarray(prob)
    label_np = np.asarray(label)
    ref = np.zeros((bs, nq, ng), np.float32)
    for b in range(bs):
        ch = np.abs(heat_np[b][:, None, :] - gt_np[b][None, :, :]).sum(-1)
        cp = 1.0 - prob_np[b][:, label_np[b]]
        ref[b] = 1.0 * ch + 1.0 * cp
    np.testing.assert_allclose(C_np, ref, rtol=1e-5, atol=1e-5)

    for b, (r, c) in enumerate(indices):
        assert r.dtype == np.int64 and c.dtype == np.int64
        assert len(r) == ng and len(c) == ng
        rr, cc = _linear_sum_assignment(ref[b])
        np.testing.assert_allclose(C_np[b][r, c].sum(), ref[b][rr, cc].sum(),
                                   rtol=1e-5, atol=1e-5)

    print("KERNEL_OK")
</pallas_src>

<mosaic_0001>
module attributes {stable_mosaic.version = 11 : i64} {
  func.func @_cost_kernel(%arg0: i32, %arg1: i32, %arg2: memref<1x8x32xf32, #tpu.memory_space<vmem>>, %arg3: memref<1x32x128xf32, #tpu.memory_space<vmem>>, %arg4: memref<1x8x4xf32, #tpu.memory_space<vmem>>, %arg5: memref<1x4x128xf32, #tpu.memory_space<vmem>>, %arg6: memref<1x8x128xf32, #tpu.memory_space<vmem>>) attributes {dimension_semantics = [#tpu.dimension_semantics<parallel>, #tpu.dimension_semantics<parallel>], iteration_bounds = array<i64: 2, 1>, scalar_prefetch = 0 : i64, scratch_operands = 0 : i64, tpu.core_type = #tpu.core_type<tc>, window_params = [{transform_indices = @transform_0, window_bounds = array<i64: 1, 8, 32>}, {transform_indices = @transform_1, window_bounds = array<i64: 1, 32, 128>}, {transform_indices = @transform_2, window_bounds = array<i64: 1, 8, 4>}, {transform_indices = @transform_3, window_bounds = array<i64: 1, 4, 128>}, {transform_indices = @transform_4, window_bounds = array<i64: 1, 8, 128>}]} {
    %c0 = arith.constant 0 : index
    %c0_0 = arith.constant 0 : index
    %c0_1 = arith.constant 0 : index
    %0 = vector.load %arg4[%c0, %c0_0, %c0_1] : memref<1x8x4xf32, #tpu.memory_space<vmem>>, vector<1x8x4xf32>
    %1 = vector.shape_cast %0 : vector<1x8x4xf32> to vector<8x4xf32>
    %c0_2 = arith.constant 0 : index
    %c0_3 = arith.constant 0 : index
    %c0_4 = arith.constant 0 : index
    %2 = vector.load %arg5[%c0_2, %c0_3, %c0_4] : memref<1x4x128xf32, #tpu.memory_space<vmem>>, vector<1x4x128xf32>
    %3 = vector.shape_cast %2 : vector<1x4x128xf32> to vector<4x128xf32>
    %cst = arith.constant dense<0.000000e+00> : vector<8x128xf32>
    %4 = tpu.matmul %1, %3, %cst {dimension_numbers = #tpu.dot_dimension_numbers<[1], [0], [0], [1], [0, 0, 1, 1], [], []>} : vector<8x4xf32>, vector<4x128xf32>, vector<8x128xf32> -> vector<8x128xf32>
    %cst_5 = arith.constant 0.000000e+00 : f32
    %5 = vector.broadcast %cst_5 : f32 to vector<8x128xf32>
    %c0_6 = arith.constant 0 : index
    %c0_7 = arith.constant 0 : index
    %c0_8 = arith.constant 0 : index
    %6 = vector.load %arg2[%c0_6, %c0_7, %c0_8] : memref<1x8x32xf32, #tpu.memory_space<vmem>>, vector<1x8x32xf32>
    %7 = vector.shape_cast %6 : vector<1x8x32xf32> to vector<8x32xf32>
    %c0_9 = arith.constant 0 : index
    %c0_10 = arith.constant 0 : index
    %c0_11 = arith.constant 0 : index
    %8 = vector.load %arg3[%c0_9, %c0_10, %c0_11] : memref<1x32x128xf32, #tpu.memory_space<vmem>>, vector<1x32x128xf32>
    %9 = vector.shape_cast %8 : vector<1x32x128xf32> to vector<32x128xf32>
    %10 = vector.extract_strided_slice %7 {offsets = [0, 0], sizes = [8, 1], strides = [1, 1]} : vector<8x32xf32> to vector<8x1xf32>
    %11 = vector.extract_strided_slice %9 {offsets = [0, 0], sizes = [1, 128], strides = [1, 1]} : vector<32x128xf32> to vector<1x128xf32>
    %12 = vector.broadcast %10 : vector<8x1xf32> to vector<8x128xf32>
    %13 = vector.broadcast %11 : vector<1x128xf32> to vector<8x128xf32>
    %14 = arith.subf %12, %13 : vector<8x128xf32>
    %15 = math.absf %14 : vector<8x128xf32>
    %16 = arith.addf %5, %15 : vector<8x128xf32>
    %17 = vector.extract_strided_slice %7 {offsets = [0, 1], sizes = [8, 1], strides = [1, 1]} : vector<8x32xf32> to vector<8x1xf32>
    %18 = vector.extract_strided_slice %9 {offsets = [1, 0], sizes = [1, 128], strides = [1, 1]} : vector<32x128xf32> to vector<1x128xf32>
    %19 = vector.broadcast %17 : vector<8x1xf32> to vector<8x128xf32>
    %20 = vector.broadcast %18 : vector<1x128xf32> to vector<8x128xf32>
    %21 = arith.subf %19, %20 : vector<8x128xf32>
    %22 = math.absf %21 : vector<8x128xf32>
    %23 = arith.addf %16, %22 : vector<8x128xf32>
    %24 = vector.extract_strided_slice %7 {offsets = [0, 2], sizes = [8, 1], strides = [1, 1]} : vector<8x32xf32> to vector<8x1xf32>
    %25 = vector.extract_strided_slice %9 {offsets = [2, 0], sizes = [1, 128], strides = [1, 1]} : vector<32x128xf32> to vector<1x128xf32>
    %26 = vector.broadcast %24 : vector<8x1xf32> to vector<8x128xf32>
    %27 = vector.broadcast %25 : vector<1x128xf32> to vector<8x128xf32>
    %28 = arith.subf %26, %27 : vector<8x128xf32>
    %29 = math.absf %28 : vector<8x128xf32>
    %30 = arith.addf %23, %29 : vector<8x128xf32>
    %31 = vector.extract_strided_slice %7 {offsets = [0, 3], sizes = [8, 1], strides = [1, 1]} : vector<8x32xf32> to vector<8x1xf32>
    %32 = vector.extract_strided_slice %9 {offsets = [3, 0], sizes = [1, 128], strides = [1, 1]} : vector<32x128xf32> to vector<1x128xf32>
    %33 = vector.broadcast %31 : vector<8x1xf32> to vector<8x128xf32>
    %34 = vector.broadcast %32 : vector<1x128xf32> to vector<8x128xf32>
    %35 = arith.subf %33, %34 : vector<8x128xf32>
    %36 = math.absf %35 : vector<8x128xf32>
    %37 = arith.addf %30, %36 : vector<8x128xf32>
    %38 = vector.extract_strided_slice %7 {offsets = [0, 4], sizes = [8, 1], strides = [1, 1]} : vector<8x32xf32> to vector<8x1xf32>
    %39 = vector.extract_strided_slice %9 {offsets = [4, 0], sizes = [1, 128], strides = [1, 1]} : vector<32x128xf32> to vector<1x128xf32>
    %40 = vector.broadcast %38 : vector<8x1xf32> to vector<8x128xf32>
    %41 = vector.broadcast %39 : vector<1x128xf32> to vector<8x128xf32>
    %42 = arith.subf %40, %41 : vector<8x128xf32>
    %43 = math.absf %42 : vector<8x128xf32>
    %44 = arith.addf %37, %43 : vector<8x128xf32>
    %45 = vector.extract_strided_slice %7 {offsets = [0, 5], sizes = [8, 1], strides = [1, 1]} : vector<8x32xf32> to vector<8x1xf32>
    %46 = vector.extract_strided_slice %9 {offsets = [5, 0], sizes = [1, 128], strides = [1, 1]} : vector<32x128xf32> to vector<1x128xf32>
    %47 = vector.broadcast %45 : vector<8x1xf32> to vector<8x128xf32>
    %48 = vector.broadcast %46 : vector<1x128xf32> to vector<8x128xf32>
    %49 = arith.subf %47, %48 : vector<8x128xf32>
    %50 = math.absf %49 : vector<8x128xf32>
    %51 = arith.addf %44, %50 : vector<8x128xf32>
    %52 = vector.extract_strided_slice %7 {offsets = [0, 6], sizes = [8, 1], strides = [1, 1]} : vector<8x32xf32> to vector<8x1xf32>
    %53 = vector.extract_strided_slice %9 {offsets = [6, 0], sizes = [1, 128], strides = [1, 1]} : vector<32x128xf32> to vector<1x128xf32>
    %54 = vector.broadcast %52 : vector<8x1xf32> to vector<8x128xf32>
    %55 = vector.broadcast %53 : vector<1x128xf32> to vector<8x128xf32>
    %56 = arith.subf %54, %55 : vector<8x128xf32>
    %57 = math.absf %56 : vector<8x128xf32>
    %58 = arith.addf %51, %57 : vector<8x128xf32>
    %59 = vector.extract_strided_slice %7 {offsets = [0, 7], sizes = [8, 1], strides = [1, 1]} : vector<8x32xf32> to vector<8x1xf32>
    %60 = vector.extract_strided_slice %9 {offsets = [7, 0], sizes = [1, 128], strides = [1, 1]} : vector<32x128xf32> to vector<1x128xf32>
    %61 = vector.broadcast %59 : vector<8x1xf32> to vector<8x128xf32>
    %62 = vector.broadcast %60 : vector<1x128xf32> to vector<8x128xf32>
    %63 = arith.subf %61, %62 : vector<8x128xf32>
    %64 = math.absf %63 : vector<8x128xf32>
    %65 = arith.addf %58, %64 : vector<8x128xf32>
    %66 = vector.extract_strided_slice %7 {offsets = [0, 8], sizes = [8, 1], strides = [1, 1]} : vector<8x32xf32> to vector<8x1xf32>
    %67 = vector.extract_strided_slice %9 {offsets = [8, 0], sizes = [1, 128], strides = [1, 1]} : vector<32x128xf32> to vector<1x128xf32>
    %68 = vector.broadcast %66 : vector<8x1xf32> to vector<8x128xf32>
    %69 = vector.broadcast %67 : vector<1x128xf32> to vector<8x128xf32>
    %70 = arith.subf %68, %69 : vector<8x128xf32>
    %71 = math.absf %70 : vector<8x128xf32>
    %72 = arith.addf %65, %71 : vector<8x128xf32>
    %73 = vector.extract_strided_slice %7 {offsets = [0, 9], sizes = [8, 1], strides = [1, 1]} : vector<8x32xf32> to vector<8x1xf32>
    %74 = vector.extract_strided_slice %9 {offsets = [9, 0], sizes = [1, 128], strides = [1, 1]} : vector<32x128xf32> to vector<1x128xf32>
    %75 = vector.broadcast %73 : vector<8x1xf32> to vector<8x128xf32>
    %76 = vector.broadcast %74 : vector<1x128xf32> to vector<8x128xf32>
    %77 = arith.subf %75, %76 : vector<8x128xf32>
    %78 = math.absf %77 : vector<8x128xf32>
    %79 = arith.addf %72, %78 : vector<8x128xf32>
    %80 = vector.extract_strided_slice %7 {offsets = [0, 10], sizes = [8, 1], strides = [1, 1]} : vector<8x32xf32> to vector<8x1xf32>
    %81 = vector.extract_strided_slice %9 {offsets = [10, 0], sizes = [1, 128], strides = [1, 1]} : vector<32x128xf32> to vector<1x128xf32>
    %82 = vector.broadcast %80 : vector<8x1xf32> to vector<8x128xf32>
    %83 = vector.broadcast %81 : vector<1x128xf32> to vector<8x128xf32>
    %84 = arith.subf %82, %83 : vector<8x128xf32>
    %85 = math.absf %84 : vector<8x128xf32>
    %86 = arith.addf %79, %85 : vector<8x128xf32>
    %87 = vector.extract_strided_slice %7 {offsets = [0, 11], sizes = [8, 1], strides = [1, 1]} : vector<8x32xf32> to vector<8x1xf32>
    %88 = vector.extract_strided_slice %9 {offsets = [11, 0], sizes = [1, 128], strides = [1, 1]} : vector<32x128xf32> to vector<1x128xf32>
    %89 = vector.broadcast %87 : vector<8x1xf32> to vector<8x128xf32>
    %90 = vector.broadcast %88 : vector<1x128xf32> to vector<8x128xf32>
    %91 = arith.subf %89, %90 : vector<8x128xf32>
    %92 = math.absf %91 : vector<8x128xf32>
    %93 = arith.addf %86, %92 : vector<8x128xf32>
    %94 = vector.extract_strided_slice %7 {offsets = [0, 12], sizes = [8, 1], strides = [1, 1]} : vector<8x32xf32> to vector<8x1xf32>
    %95 = vector.extract_strided_slice %9 {offsets = [12, 0], sizes = [1, 128], strides = [1, 1]} : vector<32x128xf32> to vector<1x128xf32>
    %96 = vector.broadcast %94 : vector<8x1xf32> to vector<8x128xf32>
    %97 = vector.broadcast %95 : vector<1x128xf32> to vector<8x128xf32>
    %98 = arith.subf %96, %97 : vector<8x128xf32>
    %99 = math.absf %98 : vector<8x128xf32>
    %100 = arith.addf %93, %99 : vector<8x128xf32>
    %101 = vector.extract_strided_slice %7 {offsets = [0, 13], sizes = [8, 1], strides = [1, 1]} : vector<8x32xf32> to vector<8x1xf32>
    %102 = vector.extract_strided_slice %9 {offsets = [13, 0], sizes = [1, 128], strides = [1, 1]} : vector<32x128xf32> to vector<1x128xf32>
    %103 = vector.broadcast %101 : vector<8x1xf32> to vector<8x128xf32>
    %104 = vector.broadcast %102 : vector<1x128xf32> to vector<8x128xf32>
    %105 = arith.subf %103, %104 : vector<8x128xf32>
    %106 = math.absf %105 : vector<8x128xf32>
    %107 = arith.addf %100, %106 : vector<8x128xf32>
    %108 = vector.extract_strided_slice %7 {offsets = [0, 14], sizes = [8, 1], strides = [1, 1]} : vector<8x32xf32> to vector<8x1xf32>
    %109 = vector.extract_strided_slice %9 {offsets = [14, 0], sizes = [1, 128], strides = [1, 1]} : vector<32x128xf32> to vector<1x128xf32>
    %110 = vector.broadcast %108 : vector<8x1xf32> to vector<8x128xf32>
    %111 = vector.broadcast %109 : vector<1x128xf32> to vector<8x128xf32>
    %112 = arith.subf %110, %111 : vector<8x128xf32>
    %113 = math.absf %112 : vector<8x128xf32>
    %114 = arith.addf %107, %113 : vector<8x128xf32>
    %115 = vector.extract_strided_slice %7 {offsets = [0, 15], sizes = [8, 1], strides = [1, 1]} : vector<8x32xf32> to vector<8x1xf32>
    %116 = vector.extract_strided_slice %9 {offsets = [15, 0], sizes = [1, 128], strides = [1, 1]} : vector<32x128xf32> to vector<1x128xf32>
    %117 = vector.broadcast %115 : vector<8x1xf32> to vector<8x128xf32>
    %118 = vector.broadcast %116 : vector<1x128xf32> to vector<8x128xf32>
    %119 = arith.subf %117, %118 : vector<8x128xf32>
    %120 = math.absf %119 : vector<8x128xf32>
    %121 = arith.addf %114, %120 : vector<8x128xf32>
    %122 = vector.extract_strided_slice %7 {offsets = [0, 16], sizes = [8, 1], strides = [1, 1]} : vector<8x32xf32> to vector<8x1xf32>
    %123 = vector.extract_strided_slice %9 {offsets = [16, 0], sizes = [1, 128], strides = [1, 1]} : vector<32x128xf32> to vector<1x128xf32>
    %124 = vector.broadcast %122 : vector<8x1xf32> to vector<8x128xf32>
    %125 = vector.broadcast %123 : vector<1x128xf32> to vector<8x128xf32>
    %126 = arith.subf %124, %125 : vector<8x128xf32>
    %127 = math.absf %126 : vector<8x128xf32>
    %128 = arith.addf %121, %127 : vector<8x128xf32>
    %129 = vector.extract_strided_slice %7 {offsets = [0, 17], sizes = [8, 1], strides = [1, 1]} : vector<8x32xf32> to vector<8x1xf32>
    %130 = vector.extract_strided_slice %9 {offsets = [17, 0], sizes = [1, 128], strides = [1, 1]} : vector<32x128xf32> to vector<1x128xf32>
    %131 = vector.broadcast %129 : vector<8x1xf32> to vector<8x128xf32>
    %132 = vector.broadcast %130 : vector<1x128xf32> to vector<8x128xf32>
    %133 = arith.subf %131, %132 : vector<8x128xf32>
    %134 = math.absf %133 : vector<8x128xf32>
    %135 = arith.addf %128, %134 : vector<8x128xf32>
    %136 = vector.extract_strided_slice %7 {offsets = [0, 18], sizes = [8, 1], strides = [1, 1]} : vector<8x32xf32> to vector<8x1xf32>
    %137 = vector.extract_strided_slice %9 {offsets = [18, 0], sizes = [1, 128], strides = [1, 1]} : vector<32x128xf32> to vector<1x128xf32>
    %138 = vector.broadcast %136 : vector<8x1xf32> to vector<8x128xf32>
    %139 = vector.broadcast %137 : vector<1x128xf32> to vector<8x128xf32>
    %140 = arith.subf %138, %139 : vector<8x128xf32>
    %141 = math.absf %140 : vector<8x128xf32>
    %142 = arith.addf %135, %141 : vector<8x128xf32>
    %143 = vector.extract_strided_slice %7 {offsets = [0, 19], sizes = [8, 1], strides = [1, 1]} : vector<8x32xf32> to vector<8x1xf32>
    %144 = vector.extract_strided_slice %9 {offsets = [19, 0], sizes = [1, 128], strides = [1, 1]} : vector<32x128xf32> to vector<1x128xf32>
    %145 = vector.broadcast %143 : vector<8x1xf32> to vector<8x128xf32>
    %146 = vector.broadcast %144 : vector<1x128xf32> to vector<8x128xf32>
    %147 = arith.subf %145, %146 : vector<8x128xf32>
    %148 = math.absf %147 : vector<8x128xf32>
    %149 = arith.addf %142, %148 : vector<8x128xf32>
    %150 = vector.extract_strided_slice %7 {offsets = [0, 20], sizes = [8, 1], strides = [1, 1]} : vector<8x32xf32> to vector<8x1xf32>
    %151 = vector.extract_strided_slice %9 {offsets = [20, 0], sizes = [1, 128], strides = [1, 1]} : vector<32x128xf32> to vector<1x128xf32>
    %152 = vector.broadcast %150 : vector<8x1xf32> to vector<8x128xf32>
    %153 = vector.broadcast %151 : vector<1x128xf32> to vector<8x128xf32>
    %154 = arith.subf %152, %153 : vector<8x128xf32>
    %155 = math.absf %154 : vector<8x128xf32>
    %156 = arith.addf %149, %155 : vector<8x128xf32>
    %157 = vector.extract_strided_slice %7 {offsets = [0, 21], sizes = [8, 1], strides = [1, 1]} : vector<8x32xf32> to vector<8x1xf32>
    %158 = vector.extract_strided_slice %9 {offsets = [21, 0], sizes = [1, 128], strides = [1, 1]} : vector<32x128xf32> to vector<1x128xf32>
    %159 = vector.broadcast %157 : vector<8x1xf32> to vector<8x128xf32>
    %160 = vector.broadcast %158 : vector<1x128xf32> to vector<8x128xf32>
    %161 = arith.subf %159, %160 : vector<8x128xf32>
    %162 = math.absf %161 : vector<8x128xf32>
    %163 = arith.addf %156, %162 : vector<8x128xf32>
    %164 = vector.extract_strided_slice %7 {offsets = [0, 22], sizes = [8, 1], strides = [1, 1]} : vector<8x32xf32> to vector<8x1xf32>
    %165 = vector.extract_strided_slice %9 {offsets = [22, 0], sizes = [1, 128], strides = [1, 1]} : vector<32x128xf32> to vector<1x128xf32>
    %166 = vector.broadcast %164 : vector<8x1xf32> to vector<8x128xf32>
    %167 = vector.broadcast %165 : vector<1x128xf32> to vector<8x128xf32>
    %168 = arith.subf %166, %167 : vector<8x128xf32>
    %169 = math.absf %168 : vector<8x128xf32>
    %170 = arith.addf %163, %169 : vector<8x128xf32>
    %171 = vector.extract_strided_slice %7 {offsets = [0, 23], sizes = [8, 1], strides = [1, 1]} : vector<8x32xf32> to vector<8x1xf32>
    %172 = vector.extract_strided_slice %9 {offsets = [23, 0], sizes = [1, 128], strides = [1, 1]} : vector<32x128xf32> to vector<1x128xf32>
    %173 = vector.broadcast %171 : vector<8x1xf32> to vector<8x128xf32>
    %174 = vector.broadcast %172 : vector<1x128xf32> to vector<8x128xf32>
    %175 = arith.subf %173, %174 : vector<8x128xf32>
    %176 = math.absf %175 : vector<8x128xf32>
    %177 = arith.addf %170, %176 : vector<8x128xf32>
    %178 = vector.extract_strided_slice %7 {offsets = [0, 24], sizes = [8, 1], strides = [1, 1]} : vector<8x32xf32> to vector<8x1xf32>
    %179 = vector.extract_strided_slice %9 {offsets = [24, 0], sizes = [1, 128], strides = [1, 1]} : vector<32x128xf32> to vector<1x128xf32>
    %180 = vector.broadcast %178 : vector<8x1xf32> to vector<8x128xf32>
    %181 = vector.broadcast %179 : vector<1x128xf32> to vector<8x128xf32>
    %182 = arith.subf %180, %181 : vector<8x128xf32>
    %183 = math.absf %182 : vector<8x128xf32>
    %184 = arith.addf %177, %183 : vector<8x128xf32>
    %185 = vector.extract_strided_slice %7 {offsets = [0, 25], sizes = [8, 1], strides = [1, 1]} : vector<8x32xf32> to vector<8x1xf32>
    %186 = vector.extract_strided_slice %9 {offsets = [25, 0], sizes = [1, 128], strides = [1, 1]} : vector<32x128xf32> to vector<1x128xf32>
    %187 = vector.broadcast %185 : vector<8x1xf32> to vector<8x128xf32>
    %188 = vector.broadcast %186 : vector<1x128xf32> to vector<8x128xf32>
    %189 = arith.subf %187, %188 : vector<8x128xf32>
    %190 = math.absf %189 : vector<8x128xf32>
    %191 = arith.addf %184, %190 : vector<8x128xf32>
    %192 = vector.extract_strided_slice %7 {offsets = [0, 26], sizes = [8, 1], strides = [1, 1]} : vector<8x32xf32> to vector<8x1xf32>
    %193 = vector.extract_strided_slice %9 {offsets = [26, 0], sizes = [1, 128], strides = [1, 1]} : vector<32x128xf32> to vector<1x128xf32>
    %194 = vector.broadcast %192 : vector<8x1xf32> to vector<8x128xf32>
    %195 = vector.broadcast %193 : vector<1x128xf32> to vector<8x128xf32>
    %196 = arith.subf %194, %195 : vector<8x128xf32>
    %197 = math.absf %196 : vector<8x128xf32>
    %198 = arith.addf %191, %197 : vector<8x128xf32>
    %199 = vector.extract_strided_slice %7 {offsets = [0, 27], sizes = [8, 1], strides = [1, 1]} : vector<8x32xf32> to vector<8x1xf32>
    %200 = vector.extract_strided_slice %9 {offsets = [27, 0], sizes = [1, 128], strides = [1, 1]} : vector<32x128xf32> to vector<1x128xf32>
    %201 = vector.broadcast %199 : vector<8x1xf32> to vector<8x128xf32>
    %202 = vector.broadcast %200 : vector<1x128xf32> to vector<8x128xf32>
    %203 = arith.subf %201, %202 : vector<8x128xf32>
    %204 = math.absf %203 : vector<8x128xf32>
    %205 = arith.addf %198, %204 : vector<8x128xf32>
    %206 = vector.extract_strided_slice %7 {offsets = [0, 28], sizes = [8, 1], strides = [1, 1]} : vector<8x32xf32> to vector<8x1xf32>
    %207 = vector.extract_strided_slice %9 {offsets = [28, 0], sizes = [1, 128], strides = [1, 1]} : vector<32x128xf32> to vector<1x128xf32>
    %208 = vector.broadcast %206 : vector<8x1xf32> to vector<8x128xf32>
    %209 = vector.broadcast %207 : vector<1x128xf32> to vector<8x128xf32>
    %210 = arith.subf %208, %209 : vector<8x128xf32>
    %211 = math.absf %210 : vector<8x128xf32>
    %212 = arith.addf %205, %211 : vector<8x128xf32>
    %213 = vector.extract_strided_slice %7 {offsets = [0, 29], sizes = [8, 1], strides = [1, 1]} : vector<8x32xf32> to vector<8x1xf32>
    %214 = vector.extract_strided_slice %9 {offsets = [29, 0], sizes = [1, 128], strides = [1, 1]} : vector<32x128xf32> to vector<1x128xf32>
    %215 = vector.broadcast %213 : vector<8x1xf32> to vector<8x128xf32>
    %216 = vector.broadcast %214 : vector<1x128xf32> to vector<8x128xf32>
    %217 = arith.subf %215, %216 : vector<8x128xf32>
    %218 = math.absf %217 : vector<8x128xf32>
    %219 = arith.addf %212, %218 : vector<8x128xf32>
    %220 = vector.extract_strided_slice %7 {offsets = [0, 30], sizes = [8, 1], strides = [1, 1]} : vector<8x32xf32> to vector<8x1xf32>
    %221 = vector.extract_strided_slice %9 {offsets = [30, 0], sizes = [1, 128], strides = [1, 1]} : vector<32x128xf32> to vector<1x128xf32>
    %222 = vector.broadcast %220 : vector<8x1xf32> to vector<8x128xf32>
    %223 = vector.broadcast %221 : vector<1x128xf32> to vector<8x128xf32>
    %224 = arith.subf %222, %223 : vector<8x128xf32>
    %225 = math.absf %224 : vector<8x128xf32>
    %226 = arith.addf %219, %225 : vector<8x128xf32>
    %227 = vector.extract_strided_slice %7 {offsets = [0, 31], sizes = [8, 1], strides = [1, 1]} : vector<8x32xf32> to vector<8x1xf32>
    %228 = vector.extract_strided_slice %9 {offsets = [31, 0], sizes = [1, 128], strides = [1, 1]} : vector<32x128xf32> to vector<1x128xf32>
    %229 = vector.broadcast %227 : vector<8x1xf32> to vector<8x128xf32>
    %230 = vector.broadcast %228 : vector<1x128xf32> to vector<8x128xf32>
    %231 = arith.subf %229, %230 : vector<8x128xf32>
    %232 = math.absf %231 : vector<8x128xf32>
    %233 = arith.addf %226, %232 : vector<8x128xf32>
    %cst_12 = arith.constant 1.000000e+00 : f32
    %234 = vector.broadcast %cst_12 : f32 to vector<8x128xf32>
    %235 = arith.mulf %234, %233 : vector<8x128xf32>
    %cst_13 = arith.constant 1.000000e+00 : f32
    %236 = vector.broadcast %cst_13 : f32 to vector<8x128xf32>
    %237 = arith.subf %236, %4 : vector<8x128xf32>
    %cst_14 = arith.constant 1.000000e+00 : f32
    %238 = vector.broadcast %cst_14 : f32 to vector<8x128xf32>
    %239 = arith.mulf %238, %237 : vector<8x128xf32>
    %240 = arith.addf %235, %239 : vector<8x128xf32>
    %c0_15 = arith.constant 0 : index
    %c0_16 = arith.constant 0 : index
    %c0_17 = arith.constant 0 : index
    %241 = vector.load %arg6[%c0_15, %c0_16, %c0_17] : memref<1x8x128xf32, #tpu.memory_space<vmem>>, vector<1x8x128xf32>
    %242 = vector.shape_cast %241 : vector<1x8x128xf32> to vector<8x128xf32>
    %243 = vector.shape_cast %240 : vector<8x128xf32> to vector<1x8x128xf32>
    tpu.vector_store %arg6[%c0_15, %c0_16, %c0_17], %243 {strides = array<i32>} : memref<1x8x128xf32, #tpu.memory_space<vmem>>, vector<1x8x128xf32>,
    return
  }
  func.func @transform_0(%arg0: i32, %arg1: i32) -> (i32, i32, i32) {
    %c0_i32 = arith.constant 0 : i32
    %c0_i32_0 = arith.constant 0 : i32
    return %arg0, %arg1, %c0_i32 : i32, i32, i32
  }
  func.func @transform_1(%arg0: i32, %arg1: i32) -> (i32, i32, i32) {
    %c0_i32 = arith.constant 0 : i32
    %c0_i32_0 = arith.constant 0 : i32
    %c0_i32_1 = arith.constant 0 : i32
    return %arg0, %c0_i32, %c0_i32_0 : i32, i32, i32
  }
  func.func @transform_2(%arg0: i32, %arg1: i32) -> (i32, i32, i32) {
    %c0_i32 = arith.constant 0 : i32
    %c0_i32_0 = arith.constant 0 : i32
    return %arg0, %arg1, %c0_i32 : i32, i32, i32
  }
  func.func @transform_3(%arg0: i32, %arg1: i32) -> (i32, i32, i32) {
    %c0_i32 = arith.constant 0 : i32
    %c0_i32_0 = arith.constant 0 : i32
    %c0_i32_1 = arith.constant 0 : i32
    return %arg0, %c0_i32, %c0_i32_0 : i32, i32, i32
  }
  func.func @transform_4(%arg0: i32, %arg1: i32) -> (i32, i32, i32) {
    %c0_i32 = arith.constant 0 : i32
    %c0_i32_0 = arith.constant 0 : i32
    return %arg0, %arg1, %c0_i32 : i32, i32, i32
  }
}

</mosaic_0001>

<bundles_post_ra>
// kernel: compute_cost_blocks.1
= control target key start
LH: loop header
LB: loop body
LE: loop exit
PB: predicated region body
PF: predicated region fallthrough
CT: control target
= control target key end

     0   :  { %s883_s15 = smov 0   ;;  %s885_s16 = smov 0   ;;  %s975_s0 = inlined_call_operand.vmem [shape: f32[2,8,32], index: 0, kind: input, shape index: {}]   ;;  %s976_s1 = inlined_call_operand.vmem [shape: f32[2,32,128], index: 1, kind: input, shape index: {}]   ;;  %s977_s2 = inlined_call_operand.vmem [shape: f32[2,8,4], index: 2, kind: input, shape index: {}]   ;;  %s978_s3 = inlined_call_operand.vmem [shape: f32[2,4,128], index: 3, kind: input, shape index: {}]   ;;  %s979_s4 = inlined_call_operand.vmem [shape: f32[2,8,128], index: 4, kind: output, shape index: {}]  }
   0x1   :  { %s887_s17 = smov 0  }
   0x2 LB: > { %s26_s18 = sadd.s32 1, %s820_s16  ;;  %p701_p0 = scmp.ge.s32.totalorder %s824_s17, 1  ;;  %s824_s17 = sphi %s887_s17, %s14_s17   ;;  %s820_s16 = sphi %s885_s16, %s981_s16   ;;  %s816_s15 = sphi %s883_s15, %s980_s15  }
   0x3   : > { %p28_p1 = scmp.ge.s32.totalorder %s26_s18, 2  ;;  %p213_p2 = scmp.lt.s32.totalorder %s824_s17, 3 }
   0x5   : > { %s983_s18 = smov (%p28_p1, %s26_s18), 0  ;;  %p214_p3 = pnand %p701_p0, %p213_p2 }
   0x6   : > { %p259_p4 = scmp.lt.s32.totalorder (!%p214_p3), %s816_s15, 1 }
   0x7   : > { %217 = sbr.rel (%p214_p3) target bundleno = 248 (0xf8), region = 36 }
   0xc   : > { %v826_v0 = vmov 2   ;;  %v827_v1 = vmov 0   ;;  %s985_s15 = smov (!%p259_p4, %s816_s15), 1  ;;  %v828_v2 = vmov 4   ;;  %v829_v4 = vmov 3  }
   0xd   : > { %771 = vset.pattern.permute.xlu1 %v826_v0  ;;  %769 = vset.pattern.permute.xlu0 %v827_v1  ;;  %s904_s19 = sshll.u32 %s985_s15, 3  ;;  %v830_v5 = vmov 1   ;;  %v831_v6 = vmov 5   ;;  %v832_v7 = vmov 6   ;;  %v833_v8 = vmov 8   ;;  %s706_s23 = sshll.u32 %s985_s15, 2 }
   0xe   : > { %773 = vset.pattern.permute.xlu2 %v828_v2  ;;  %s265_s22 = scalar_lea.vmem %s975_s0, %s904_s19  ;;  %v834_v9 = vmov 7   ;;  %v835_v10 = vmov 9   ;;  %v836_v11 = vmov 13   ;;  %v837_v12 = vmov 10   ;;  %s281_s26 = scalar_lea.vmem %s978_s3, %s706_s23 }
   0xf   : > { %v910_v3 = vld [vmem:[%s265_s22] sm:$0xff]  ;;  %v838_v13 = vmov 11   ;;  %v839_v14 = vmov 18   ;;  %v840_v15 = vmov 12   ;;  %v841_v16 = vmov 14   ;;  %s277_s29 = scalar_lea.vmem %s977_s2, %s904_s19  ;;  %s712_s30 = sshll.u32 %s985_s15, 5 }
  0x10   : > { %342 = vperm.xlu1 %771, %v910_v3   ;;  %326 = vperm.xlu0 %769, %v910_v3   ;;  %v842_v17 = vmov 23   ;;  %v843_v18 = vmov 15   ;;  %v844_v19 = vmov 16   ;;  %v845_v20 = vmov 17   ;;  %v290_v24 = vld [vmem:[%s281_s26] sm:$0xf]  ;;  %s956_s7 = scalar_lea.vmem %s976_s1, %s712_s30  ;;  %s288_s10 = scalar_lea.vmem %s979_s4, %s904_s19 }
  0x11   : > { %358 = vperm.xlu2 %773, %v910_v3   ;;  %v846_v21 = vmov 28   ;;  %v847_v22 = vmov 19   ;;  %v848_v23 = vmov 20   ;;  %vm295_vm0 = vcmask 1043456   ;;  %v289_v25 = vld [vmem:[%s277_s29] sm:$0xff] }
  0x12   : > { %vm291_vm1 = vcmask 31744   ;;  %708 = vmatpush.msk.msra.mxu0 %vm295_vm0, %v290_v24  ;;  %v849_v26 = vmov 31   ;;  %v850_v27 = vmov 21   ;;  %v851_v28 = vmov 22   ;;  %v320_v39 = vld [vmem:[%s956_s7] sm:$0xff] }
  0x13   : > { %709 = vmatmul.msk.f32.vlgmr.msra.gmra.mxu0 %vm291_vm1, %v289_v25  ;;  %v852_v29 = vmov 24   ;;  %v853_v30 = vmov 25   ;;  %v854_v31 = vmov 26   ;;  %v855_v32 = vmov 27  }
  0x14   : > { %v856_v33 = vmov 29   ;;  %v857_v34 = vmov 30   ;;  %v329_v40 = vperm.slane %v320_v39, 0  ;;  %v337_v42 = vperm.slane %v320_v39, 1 }
  0x15   : > { %v345_v43 = vperm.slane %v320_v39, 2  ;;  %v353_v50 = vperm.slane %v320_v39, 3  ;;  %v361_v54 = vperm.slane %v320_v39, 4  ;;  %v369_v57 = vperm.slane %v320_v39, 5 }
  0x16   : > { %v377_v0 = vperm.slane %v320_v39, 6 }
  0x18   : > { %772 = vset.pattern.permute.xlu1 %v829_v4  ;;  %770 = vset.pattern.permute.xlu0 %v830_v5  ;;  %v385_v5 = vperm.slane %v320_v39, 7 }
  0x19   : > { %350 = vperm.xlu1 %772, %v910_v3   ;;  %334 = vperm.xlu0 %770, %v910_v3  }
  0x1a   : > { %774 = vset.pattern.permute.xlu2 %v831_v6  ;;  %v321_v6 = vld [vmem:[%s956_s7 + $0x8] sm:$0xff] }
  0x1b   : > { %366 = vperm.xlu2 %774, %v910_v3  }
  0x21   : > { %775 = vset.pattern.permute.xlu1 %v832_v7  ;;  %777 = vset.pattern.permute.xlu0 %v833_v8 }
  0x22   : > { %374 = vperm.xlu1 %775, %v910_v3   ;;  %390 = vperm.xlu0 %777, %v910_v3  }
  0x23   : > { %776 = vset.pattern.permute.xlu2 %v834_v9 }
  0x24   : > { %382 = vperm.xlu2 %776, %v910_v3  }
  0x2a   : > { %778 = vset.pattern.permute.xlu1 %v835_v10  ;;  %782 = vset.pattern.permute.xlu0 %v836_v11  ;;  %v393_v11 = vperm.slane %v321_v6, 0 }
  0x2b   : > { %398 = vperm.xlu1 %778, %v910_v3   ;;  %430 = vperm.xlu0 %782, %v910_v3  }
  0x2c   : > { %779 = vset.pattern.permute.xlu2 %v837_v12 }
  0x2d   : > { %406 = vperm.xlu2 %779, %v910_v3  }
  0x33   : > { %780 = vset.pattern.permute.xlu1 %v838_v13  ;;  %787 = vset.pattern.permute.xlu0 %v839_v14  ;;  %v401_v14 = vperm.slane %v321_v6, 1 }
  0x34   : > { %414 = vperm.xlu1 %780, %v910_v3   ;;  %470 = vperm.xlu0 %787, %v910_v3  }
  0x35   : > { %781 = vset.pattern.permute.xlu2 %v840_v15 }
  0x36   : > { %422 = vperm.xlu2 %781, %v910_v3  }
  0x3c   : > { %783 = vset.pattern.permute.xlu1 %v841_v16  ;;  %792 = vset.pattern.permute.xlu0 %v842_v17 }
  0x3d   : > { %438 = vperm.xlu1 %783, %v910_v3   ;;  %510 = vperm.xlu0 %792, %v910_v3  }
  0x3e   : > { %784 = vset.pattern.permute.xlu2 %v843_v18 }
  0x3f   : > { %446 = vperm.xlu2 %784, %v910_v3  }
  0x45   : > { %785 = vset.pattern.permute.xlu1 %v844_v19  ;;  %797 = vset.pattern.permute.xlu0 %v846_v21  ;;  %v409_v19 = vperm.slane %v321_v6, 2 }
  0x46   : > { %454 = vperm.xlu1 %785, %v910_v3   ;;  %550 = vperm.xlu0 %797, %v910_v3  }
  0x47   : > { %786 = vset.pattern.permute.xlu2 %v845_v20 }
  0x48   : > { %462 = vperm.xlu2 %786, %v910_v3  }
  0x4e   : > { %788 = vset.pattern.permute.xlu1 %v847_v22  ;;  %801 = vset.pattern.permute.xlu0 %v849_v26 }
  0x4f   : > { %478 = vperm.xlu1 %788, %v910_v3  }
  0x50   : > { %789 = vset.pattern.permute.xlu2 %v848_v23  ;;  %v417_v23 = vperm.slane %v321_v6, 3 }
  0x51   : > { %486 = vperm.xlu2 %789, %v910_v3  }
  0x57   : > { %790 = vset.pattern.permute.xlu1 %v850_v27 }
  0x58   : > { %494 = vperm.xlu1 %790, %v910_v3  }
  0x59   : > { %791 = vset.pattern.permute.xlu2 %v851_v28 }
  0x5a   : > { %502 = vperm.xlu2 %791, %v910_v3  }
  0x60   : > { %793 = vset.pattern.permute.xlu1 %v852_v29  ;;  %v425_v29 = vperm.slane %v321_v6, 4 }
  0x61   : > { %518 = vperm.xlu1 %793, %v910_v3  }
  0x62   : > { %794 = vset.pattern.permute.xlu2 %v853_v30 }
  0x63   : > { %526 = vperm.xlu2 %794, %v910_v3  }
  0x69   : > { %795 = vset.pattern.permute.xlu1 %v854_v31 }
  0x6a   : > { %534 = vperm.xlu1 %795, %v910_v3  }
  0x6b   : > { %796 = vset.pattern.permute.xlu2 %v855_v32  ;;  %v359_v35 = vpop.permute.xlu2 %358 }
  0x6c   : > { %542 = vperm.xlu2 %796, %v910_v3   ;;  %v362_v59 = vsub.f32 %v359_v35, %v361_v54 }
  0x6e   : > { %v363_v1 = vand.u32 2147483647, %v362_v59 }
  0x72   : > { %798 = vset.pattern.permute.xlu1 %v856_v33 }
  0x73   : > { %558 = vperm.xlu1 %798, %v910_v3  }
  0x74   : > { %799 = vset.pattern.permute.xlu2 %v857_v34  ;;  %v433_v34 = vperm.slane %v321_v6, 5 }
  0x75   : > { %566 = vperm.xlu2 %799, %v910_v3   ;;  %v367_v36 = vpop.permute.xlu2 %366 }
  0x76   : > { %v370_v63 = vsub.f32 %v367_v36, %v369_v57 }
  0x7b   : > { %800 = vset.pattern.permute.xlu1 %v849_v26 }
  0x7c   : > { %574 = vperm.xlu1 %800, %v910_v3   ;;  %v371_v3 = vand.u32 2147483647, %v370_v63 }
  0x7e   : > { %v383_v48 = vpop.permute.xlu2 %382 }
  0x7f   : > { %v386_v10 = vsub.f32 %v383_v48, %v385_v5 }
  0x81   : > { %v387_v16 = vand.u32 2147483647, %v386_v10 }
  0x82   : > { %v343_v37 = vpop.permute.xlu1 %342  ;;  %v327_v38 = vpop.permute.xlu0 %326 }
  0x83   : > { %v330_v41 = vsub.f32 %v327_v38, %v329_v40  ;;  %v346_v49 = vsub.f32 %v343_v37, %v345_v43  ;;  %v441_v38 = vperm.slane %v321_v6, 6 }
  0x85   : > { %v331_v46 = vand.u32 2147483647, %v330_v41  ;;  %v347_v53 = vand.u32 2147483647, %v346_v49 }
  0x87   : > { %v407_v61 = vpop.permute.xlu2 %406 }
  0x88   : > { %v410_v25 = vsub.f32 %v407_v61, %v409_v19 }
  0x8a   : > { %v411_v31 = vand.u32 2147483647, %v410_v25 }
  0x8b   : > { %v351_v44 = vpop.permute.xlu1 %350  ;;  %v335_v45 = vpop.permute.xlu0 %334 }
  0x8c   : > { %v338_v47 = vsub.f32 %v335_v45, %v337_v42  ;;  %v354_v55 = vsub.f32 %v351_v44, %v353_v50  ;;  %v322_v42 = vld [vmem:[%s956_s7 + $0x10] sm:$0xff]  ;;  %v449_v45 = vperm.slane %v321_v6, 7 }
  0x8d   : > { %v457_v48 = vperm.slane %v322_v42, 0  ;;  %v465_v54 = vperm.slane %v322_v42, 1  ;;  %v481_v63 = vperm.slane %v322_v42, 3  ;;  %v489_v5 = vperm.slane %v322_v42, 4 }
  0x8e   : > { %v339_v51 = vand.u32 2147483647, %v338_v47  ;;  %v355_v60 = vand.u32 2147483647, %v354_v55 }
  0x90   : > { %v340_v52 = vadd.f32 %v339_v51, %v331_v46  ;;  %v423_v13 = vpop.permute.xlu2 %422 }
  0x91   : > { %v426_v33 = vsub.f32 %v423_v13, %v425_v29 }
  0x92   : > { %v348_v56 = vadd.f32 %v347_v53, %v340_v52 }
  0x93   : > { %v427_v40 = vand.u32 2147483647, %v426_v33 }
  0x94   : > { %v375_v58 = vpop.permute.xlu1 %374  ;;  %v356_v62 = vadd.f32 %v355_v60, %v348_v56  ;;  %v391_v12 = vpop.permute.xlu0 %390  ;;  %v473_v60 = vperm.slane %v322_v42, 2 }
  0x95   : > { %v378_v4 = vsub.f32 %v375_v58, %v377_v0  ;;  %v394_v17 = vsub.f32 %v391_v12, %v393_v11 }
  0x96   : > { %v364_v2 = vadd.f32 %v363_v1, %v356_v62 }
  0x97   : > { %v379_v9 = vand.u32 2147483647, %v378_v4  ;;  %v395_v22 = vand.u32 2147483647, %v394_v17 }
  0x98   : > { %v372_v8 = vadd.f32 %v371_v3, %v364_v2 }
  0x99   : > { %v447_v26 = vpop.permute.xlu2 %446 }
  0x9a   : > { %v380_v15 = vadd.f32 %v379_v9, %v372_v8  ;;  %v450_v51 = vsub.f32 %v447_v26, %v449_v45  ;;  %v497_v8 = vperm.slane %v322_v42, 5 }
  0x9c   : > { %v388_v21 = vadd.f32 %v387_v16, %v380_v15  ;;  %v451_v56 = vand.u32 2147483647, %v450_v51  ;;  %v505_v15 = vperm.slane %v322_v42, 6 }
  0x9d   : > { %v399_v7 = vpop.permute.xlu1 %398  ;;  %v431_v36 = vpop.permute.xlu0 %430 }
  0x9e   : > { %v402_v18 = vsub.f32 %v399_v7, %v401_v14  ;;  %v396_v27 = vadd.f32 %v395_v22, %v388_v21  ;;  %v434_v41 = vsub.f32 %v431_v36, %v433_v34  ;;  %v513_v21 = vperm.slane %v322_v42, 7 }
  0xa0   : > { %v403_v24 = vand.u32 2147483647, %v402_v18  ;;  %v435_v47 = vand.u32 2147483647, %v434_v41  ;;  %v323_v18 = vld [vmem:[%s956_s7 + $0x18] sm:$0xff] }
  0xa1   : > { %v537_v36 = vperm.slane %v323_v18, 2 }
  0xa2   : > { %v404_v30 = vadd.f32 %v403_v24, %v396_v27  ;;  %v463_v43 = vpop.permute.xlu2 %462  ;;  %v521_v24 = vperm.slane %v323_v18, 0 }
  0xa3   : > { %v466_v59 = vsub.f32 %v463_v43, %v465_v54  ;;  %v569_v54 = vperm.slane %v323_v18, 6 }
  0xa4   : > { %v412_v37 = vadd.f32 %v411_v31, %v404_v30  ;;  %v529_v31 = vperm.slane %v323_v18, 1 }
  0xa5   : > { %v467_v2 = vand.u32 2147483647, %v466_v59 }
  0xa6   : > { %v415_v20 = vpop.permute.xlu1 %414  ;;  %v471_v61 = vpop.permute.xlu0 %470 }
  0xa7   : > { %v418_v28 = vsub.f32 %v415_v20, %v417_v23  ;;  %v474_v3 = vsub.f32 %v471_v61, %v473_v60 }
  0xa9   : > { %v419_v32 = vand.u32 2147483647, %v418_v28  ;;  %v475_v7 = vand.u32 2147483647, %v474_v3 }
  0xab   : > { %v420_v39 = vadd.f32 %v419_v32, %v412_v37  ;;  %v487_v57 = vpop.permute.xlu2 %486 }
  0xac   : > { %v490_v11 = vsub.f32 %v487_v57, %v489_v5 }
  0xad   : > { %v428_v46 = vadd.f32 %v427_v40, %v420_v39 }
  0xae   : > { %v491_v17 = vand.u32 2147483647, %v490_v11 }
  0xaf   : > { %v439_v35 = vpop.permute.xlu1 %438  ;;  %v436_v52 = vadd.f32 %v435_v47, %v428_v46  ;;  %v511_v22 = vpop.permute.xlu0 %510  ;;  %v553_v46 = vperm.slane %v323_v18, 4 }
  0xb0   : > { %v442_v44 = vsub.f32 %v439_v35, %v441_v38  ;;  %v514_v28 = vsub.f32 %v511_v22, %v513_v21  ;;  %v545_v38 = vperm.slane %v323_v18, 3 }
  0xb2   : > { %v443_v50 = vand.u32 2147483647, %v442_v44  ;;  %v515_v33 = vand.u32 2147483647, %v514_v28 }
  0xb4   : > { %v444_v55 = vadd.f32 %v443_v50, %v436_v52  ;;  %v503_v9 = vpop.permute.xlu2 %502 }
  0xb5   : > { %v506_v20 = vsub.f32 %v503_v9, %v505_v15 }
  0xb6   : > { %v452_v62 = vadd.f32 %v451_v56, %v444_v55 }
  0xb7   : > { %v507_v27 = vand.u32 2147483647, %v506_v20 }
  0xb8   : > { %v455_v49 = vpop.permute.xlu1 %454  ;;  %v551_v47 = vpop.permute.xlu0 %550 }
  0xb9   : > { %v458_v53 = vsub.f32 %v455_v49, %v457_v48  ;;  %v561_v49 = vperm.slane %v323_v18, 5  ;;  %v554_v52 = vsub.f32 %v551_v47, %v553_v46 }
  0xbb   : > { %v459_v58 = vand.u32 2147483647, %v458_v53 }
  0xbd   : > { %v460_v1 = vadd.f32 %v459_v58, %v452_v62  ;;  %v527_v25 = vpop.permute.xlu2 %526  ;;  %v555_v58 = vand.u32 2147483647, %v554_v52  ;;  %v577_v62 = vperm.slane %v323_v18, 7 }
  0xbe   : > { %v530_v35 = vsub.f32 %v527_v25, %v529_v31 }
  0xbf   : > { %v468_v6 = vadd.f32 %v467_v2, %v460_v1  ;;  %v316_v2 = vpop.f32.mrf.mxu0 }
  0xc0   : > { %v531_v42 = vand.u32 2147483647, %v530_v35 }
  0xc1   : > { %v479_v0 = vpop.permute.xlu1 %478  ;;  %v476_v13 = vadd.f32 %v475_v7, %v468_v6  ;;  %v581_v6 = vsub.f32 1.0, %v316_v2 }
  0xc2   : > { %v482_v4 = vsub.f32 %v479_v0, %v481_v63 }
  0xc4   : > { %v483_v10 = vand.u32 2147483647, %v482_v4 }
  0xc6   : > { %v484_v16 = vadd.f32 %v483_v10, %v476_v13  ;;  %v543_v40 = vpop.permute.xlu2 %542 }
  0xc7   : > { %v546_v45 = vsub.f32 %v543_v40, %v545_v38 }
  0xc8   : > { %v492_v23 = vadd.f32 %v491_v17, %v484_v16 }
  0xc9   : > { %v547_v51 = vand.u32 2147483647, %v546_v45 }
  0xca   : > { %v495_v12 = vpop.permute.xlu1 %494 }
  0xcb   : > { %v498_v14 = vsub.f32 %v495_v12, %v497_v8 }
  0xcd   : > { %v499_v19 = vand.u32 2147483647, %v498_v14 }
  0xcf   : > { %v500_v26 = vadd.f32 %v499_v19, %v492_v23  ;;  %v567_v56 = vpop.permute.xlu2 %566 }
  0xd0   : > { %v570_v60 = vsub.f32 %v567_v56, %v569_v54 }
  0xd1   : > { %v508_v32 = vadd.f32 %v507_v27, %v500_v26 }
  0xd2   : > { %v571_v0 = vand.u32 2147483647, %v570_v60 }
  0xd3   : > { %v519_v29 = vpop.permute.xlu1 %518  ;;  %v516_v37 = vadd.f32 %v515_v33, %v508_v32 }
  0xd4   : > { %v522_v30 = vsub.f32 %v519_v29, %v521_v24 }
  0xd6   : > { %v523_v34 = vand.u32 2147483647, %v522_v30 }
  0xd8   : > { %v524_v41 = vadd.f32 %v523_v34, %v516_v37 }
  0xda   : > { %v532_v48 = vadd.f32 %v531_v42, %v524_v41 }
  0xdc   : > { %v535_v39 = vpop.permute.xlu1 %534 }
  0xdd   : > { %v538_v43 = vsub.f32 %v535_v39, %v537_v36 }
  0xdf   : > { %v539_v44 = vand.u32 2147483647, %v538_v43 }
  0xe1   : > { %v540_v50 = vadd.f32 %v539_v44, %v532_v48 }
  0xe3   : > { %v548_v57 = vadd.f32 %v547_v51, %v540_v50 }
  0xe5   : > { %v559_v53 = vpop.permute.xlu1 %558  ;;  %v556_v61 = vadd.f32 %v555_v58, %v548_v57 }
  0xe6   : > { %v562_v55 = vsub.f32 %v559_v53, %v561_v49 }
  0xe8   : > { %v563_v59 = vand.u32 2147483647, %v562_v55 }
  0xea   : > { %v564_v63 = vadd.f32 %v563_v59, %v556_v61 }
  0xec   : > { %v572_v4 = vadd.f32 %v571_v0, %v564_v63 }
  0xee   : > { %v575_v1 = vpop.permute.xlu1 %574 }
  0xef   : > { %v578_v3 = vsub.f32 %v575_v1, %v577_v62 }
  0xf1   : > { %v579_v5 = vand.u32 2147483647, %v578_v3 }
  0xf3   : > { %v580_v7 = vadd.f32 %v579_v5, %v572_v4 }
  0xf5   : > { %v582_v8 = vadd.f32 %v581_v6, %v580_v7 }
  0xf7   : > { %583 = vst [vmem:[%s288_s10] sm:$0xff] %v582_v8 }
  0xf8 PF: > { %s14_s17 = sadd.s32 1, %s824_s17   ;;  %s980_s15 = smov %s820_s16 }
  0xf9   : > { %p11_p5 = scmp.ge.s32.totalorder %s14_s17, 4   ;;  %s981_s16 = smov %s983_s18 }
  0xfb   :  { %13 = sbr.rel (!%p11_p5) target bundleno = 2 (0x2), region = 75 }

</bundles_post_ra>
